<compile_context>
chip_gen: v7x
topology: tpu7x:2x2x1
jax: 0.10.0
libtpu: 0.0.40
codegen_flags: <defaults>
</compile_context>

<pallas_src>
import math
import functools

import jax
import jax.numpy as jnp
from jax.experimental import pallas as pl
from jax.experimental.pallas import tpu as pltpu


# ---------------------------------------------------------------------------
# Kernel
# ---------------------------------------------------------------------------
def _mha_kernel(x_ref, wqkv_ref, o_ref, *, head_num, head_dim, masked,
                matmul_dtype, approx_recip):
    bb, N, D = x_ref.shape            # batch-block, seq, model dim
    H, hd = head_num, head_dim

    # Fused QKV projection: one MXU pass with M = bb*N, f32 accumulation.
    x = x_ref[...].reshape(bb * N, D)
    qkv = jnp.dot(x, wqkv_ref[...], preferred_element_type=jnp.float32)
    qkv = qkv.astype(matmul_dtype)                       # (bb*N, 3D)

    # Split heads ONCE (instead of 3*H narrow lane slices) and fold the head
    # axis into the batch axis of a single 3-D batched contraction.
    def split_heads(t2d):                                # (bb*N, D') -> (bb*H, N, hd)
        t = t2d.reshape(bb, N, H, hd)
        return jnp.transpose(t, (0, 2, 1, 3)).reshape(bb * H, N, hd)

    q = split_heads(qkv[:, 0:D])
    k = split_heads(qkv[:, D:2 * D])
    v = split_heads(qkv[:, 2 * D:3 * D])

    # Scores for all heads at once; contract last-vs-last (no K transpose).
    inv_scale = 1.0 / math.sqrt(hd)
    s = jnp.einsum("znd,zmd->znm", q, k,
                   preferred_element_type=jnp.float32) * inv_scale   # (bb*H, N, N)
    s = s - jnp.max(s, axis=-1, keepdims=True)
    p = jnp.exp(s)
    denom = jnp.sum(p, axis=-1, keepdims=True)
    alpha = p * pl.reciprocal(denom, approx=approx_recip)

    if masked:
        # PyTorch zeroes the strict upper triangle POST-softmax, and only for
        # global batch index 0.  Grid axis 0 tiles the batch, so global batch
        # 0 can only live in grid step 0 and (within this block) in the first
        # H rows of the folded (bb*H) axis.  Everything is gated on that
        # scalar condition so non-first steps pay ~nothing.
        row = jax.lax.broadcasted_iota(jnp.int32, (N, N), 0)
        col = jax.lax.broadcasted_iota(jnp.int32, (N, N), 1)
        tri = (col > row)[None, :, :]                                  # (1, N, N)
        zi = jax.lax.broadcasted_iota(jnp.int32, (bb * H, 1, 1), 0)
        is_batch0 = jnp.logical_and(zi < H, pl.program_id(0) == 0)     # (bb*H,1,1)
        alpha = jnp.where(jnp.logical_and(tri, is_batch0), 0.0, alpha)

    # Output for all heads in one contraction, then one relayout back to
    # (bb, N, D) and a single lane-dense store / cast.
    y = jnp.einsum("znm,zmd->znd", alpha.astype(matmul_dtype), v,
                   preferred_element_type=jnp.float32)                 # (bb*H, N, hd)
    y = jnp.transpose(y.reshape(bb, H, N, hd), (0, 2, 1, 3)).reshape(bb, N, D)
    o_ref[...] = y.astype(o_ref.dtype)


# ---------------------------------------------------------------------------
# VMEM budgeting / tiling
# ---------------------------------------------------------------------------
def _vmem_limit_bytes():
    """~75% of physical per-core VMEM (96 MiB v5e/v6e, 48 MiB v7x).

    Leaves headroom for Mosaic internal scratch, semaphores and the
    double-buffered BlockSpec windows.  Falls back conservatively (v7x-sized)
    if the hardware query is unavailable.
    """
    cap = 64 << 20
    try:
        info = pltpu.get_tpu_info()
        cap = int(getattr(info, "vmem_capacity_bytes", cap))
    except Exception:  # query not available in this environment
        pass
    cap = max(cap, 32 << 20)
    return (cap * 3) // 4


def _pick_batch_block(B, N, D, head_num, in_isz, out_isz, budget_bytes):
    """Largest divisor of B whose per-step VMEM footprint fits the budget,
    then capped so the grid has >= 2 steps whenever B >= 2 (megacore / DMA
    overlap)."""

    def est(bb):
        m = bb * N
        qkv_bytes = m * 3 * D * (4 + in_isz)              # f32 acc + cast copy
        head_bytes = 3 * m * D * in_isz                   # head-major q/k/v copies
        score_bytes = 3 * bb * head_num * N * N * 4       # s, p, alpha (f32)
        y_bytes = 2 * m * D * 4 + m * D * out_isz         # y, relayout, cast slab
        io_bytes = 2 * m * D * in_isz + 2 * m * D * out_isz   # dbl-buffered x / out
        w_bytes = 2 * D * 3 * D * in_isz                  # dbl-buffered fused weight
        mask_bytes = N * N * 4
        total = (qkv_bytes + head_bytes + score_bytes + y_bytes
                 + io_bytes + w_bytes + mask_bytes)
        return int(1.25 * total)                          # fudge for Mosaic temps

    bb = B
    while bb > 1 and (B % bb != 0 or est(bb) > budget_bytes):
        bb -= 1

    # Guarantee >= 2 grid steps on the parallel batch axis when possible:
    # feeds both v7x TensorCores and gives the pipeline DMA/compute overlap.
    if B >= 2:
        while bb > 1 and (B % bb != 0 or B // bb < 2):
            bb -= 1

    if est(1) > budget_bytes:
        # TODO(synk): fall back to flash-style q/kv tiling instead of failing.
        raise ValueError(
            f"MultiHeadAttention tile (bb=1, N={N}, D={D}, H={head_num}) needs "
            f"~{est(1)} B of VMEM > budget {budget_bytes} B; sequence tiling "
            f"is not implemented yet.")
    return max(bb, 1)


# ---------------------------------------------------------------------------
# Public wrappers
# ---------------------------------------------------------------------------
def fuse_qkv_weights(wq, wk, wv, dtype=jnp.bfloat16):
    """Fuse Wq|Wk|Wv into one (D, 3D) matrix and cast ONCE.

    Do this outside the per-call path (or close over it under jit) so the
    fused weight is not re-materialized in HBM on every forward call.
    """
    return jnp.concatenate([wq, wk, wv], axis=1).astype(dtype)


def multi_head_attention(content, wqkv, *, head_num, masked=False,
                         matmul_dtype=jnp.bfloat16, approx_recip=True):
    """content: (B, N, D); wqkv: pre-fused (D, 3D).  Returns (B, N, D)."""
    B, N, D = content.shape
    assert D % head_num == 0, "dim must be divisible by head_num"
    assert wqkv.shape == (D, 3 * D), "wqkv must be the fused (D, 3D) weight"
    head_dim = D // head_num

    x = content.astype(matmul_dtype)
    wqkv = wqkv.astype(matmul_dtype)      # no-op if caller used fuse_qkv_weights

    vmem_limit = _vmem_limit_bytes()
    bb = _pick_batch_block(
        B, N, D, head_num,
        jnp.dtype(matmul_dtype).itemsize, jnp.dtype(content.dtype).itemsize,
        budget_bytes=vmem_limit // 2)

    kernel = functools.partial(
        _mha_kernel, head_num=head_num, head_dim=head_dim, masked=masked,
        matmul_dtype=matmul_dtype, approx_recip=approx_recip)

    return pl.pallas_call(
        kernel,
        out_shape=jax.ShapeDtypeStruct((B, N, D), content.dtype),
        grid_spec=pltpu.PrefetchScalarGridSpec(
            num_scalar_prefetch=0,
            grid=(B // bb,),
            in_specs=[
                pl.BlockSpec((bb, N, D), lambda b: (b, 0, 0)),     # content block
                pl.BlockSpec((D, 3 * D), lambda b: (0, 0)),        # fused Wqkv (constant)
            ],
            out_specs=pl.BlockSpec((bb, N, D), lambda b: (b, 0, 0)),
        ),
        compiler_params=pltpu.CompilerParams(
            dimension_semantics=("parallel",),
            vmem_limit_bytes=vmem_limit,
        ),
    )(x, wqkv)


# ---------------------------------------------------------------------------
# Pure-JAX reference and self-test
# ---------------------------------------------------------------------------
def _reference(content, wq, wk, wv, *, head_num, masked=False):
    """Pure-JAX f32 reference mirroring the PyTorch forward (incl. its
    post-softmax, batch-0-only masking quirk)."""
    B, N, D = content.shape
    hd = D // head_num
    q = content @ wq
    k = content @ wk
    v = content @ wv
    outs = []
    for h in range(head_num):
        qh = q[..., h * hd:(h + 1) * hd]
        kh = k[..., h * hd:(h + 1) * hd]
        vh = v[..., h * hd:(h + 1) * hd]
        s = jnp.einsum("bnd,bmd->bnm", qh, kh) / math.sqrt(hd)
        alpha = jax.nn.softmax(s, axis=-1)
        if masked:
            row = jnp.arange(N)[:, None]
            col = jnp.arange(N)[None, :]
            tri = col > row
            alpha = alpha.at[0].set(jnp.where(tri, 0.0, alpha[0]))
        outs.append(jnp.einsum("bnm,bmd->bnd", alpha, vh))
    return jnp.concatenate(outs, axis=-1)


if __name__ == "__main__":
    # Small shapes consistent with the module: batch=2, seq=8, dim=32, heads=4.
    B, N, D, H = 2, 8, 32, 4

    key = jax.random.PRNGKey(0)
    k0, k1, k2, k3 = jax.random.split(key, 4)
    content = jax.random.normal(k0, (B, N, D), dtype=jnp.float32)

    # Module __init__ uses identity parameters; perturbed identities are also
    # exercised to validate the fused projection / head plumbing.
    eye = jnp.eye(D, dtype=jnp.float32)
    wq_p = eye + 0.05 * jax.random.normal(k1, (D, D), dtype=jnp.float32)
    wk_p = eye + 0.05 * jax.random.normal(k2, (D, D), dtype=jnp.float32)
    wv_p = eye + 0.05 * jax.random.normal(k3, (D, D), dtype=jnp.float32)

    # Fused weights are built ONCE per dtype path and reused (review item).
    wqkv_eye_f32 = fuse_qkv_weights(eye, eye, eye, dtype=jnp.float32)
    wqkv_p_f32 = fuse_qkv_weights(wq_p, wk_p, wv_p, dtype=jnp.float32)
    wqkv_p_bf16 = fuse_qkv_weights(wq_p, wk_p, wv_p, dtype=jnp.bfloat16)

    # 1) Precise path (f32 matmuls, exact reciprocal), identity weights,
    #    masked and unmasked: tight check against the f32 reference.
    #    (masked exercises both grid steps: step 0 masked, step 1 not.)
    for masked in (False, True):
        y = multi_head_attention(content, wqkv_eye_f32, head_num=H,
                                 masked=masked, matmul_dtype=jnp.float32,
                                 approx_recip=False)
        y = jax.block_until_ready(y)
        y_ref = _reference(content, eye, eye, eye, head_num=H, masked=masked)
        assert y.shape == (B, N, D)
        assert jnp.allclose(y, y_ref, atol=1e-4, rtol=1e-4), \
            f"precise path mismatch (masked={masked})"

    # 2) Precise path with perturbed weights: validates projection/head slicing
    #    (loose tolerance absorbs any matmul-precision asymmetry vs. XLA).
    y = multi_head_attention(content, wqkv_p_f32, head_num=H, masked=True,
                             matmul_dtype=jnp.float32, approx_recip=False)
    y = jax.block_until_ready(y)
    y_ref = _reference(content, wq_p, wk_p, wv_p, head_num=H, masked=True)
    assert jnp.allclose(y, y_ref, atol=0.15, rtol=0.15), \
        "perturbed-weight path mismatch"

    # 3) Fast path (bf16 MXU + approx reciprocal): loose tolerance is a
    #    precision budget, not a bug.
    y_fast = multi_head_attention(content, wqkv_p_bf16, head_num=H,
                                  masked=False)
    y_fast = jax.block_until_ready(y_fast)
    y_ref = _reference(content, wq_p, wk_p, wv_p, head_num=H, masked=False)
    assert y_fast.shape == (B, N, D)
    assert jnp.allclose(y_fast, y_ref, atol=0.15, rtol=0.15), \
        "bf16 fast path mismatch"

    print("KERNEL_OK")
</pallas_src>

<mosaic_0001>
module attributes {stable_mosaic.version = 11 : i64} {
  func.func @_mha_kernel(%arg0: i32, %arg1: memref<1x8x32xf32, #tpu.memory_space<vmem>>, %arg2: memref<32x96xf32, #tpu.memory_space<vmem>>, %arg3: memref<1x8x32xf32, #tpu.memory_space<vmem>>) attributes {dimension_semantics = [#tpu.dimension_semantics<parallel>], iteration_bounds = array<i64: 2>, scalar_prefetch = 0 : i64, scratch_operands = 0 : i64, tpu.core_type = #tpu.core_type<tc>, window_params = [{transform_indices = @transform_0, window_bounds = array<i64: 1, 8, 32>}, {pipeline_mode = #tpu.pipeline_mode<synchronous>, transform_indices = @transform_1, window_bounds = array<i64: 32, 96>}, {transform_indices = @transform_2, window_bounds = array<i64: 1, 8, 32>}]} {
    %c0 = arith.constant 0 : index
    %c0_0 = arith.constant 0 : index
    %c0_1 = arith.constant 0 : index
    %0 = vector.load %arg1[%c0, %c0_0, %c0_1] : memref<1x8x32xf32, #tpu.memory_space<vmem>>, vector<1x8x32xf32>
    %1 = vector.shape_cast %0 : vector<1x8x32xf32> to vector<8x32xf32>
    %c0_2 = arith.constant 0 : index
    %c0_3 = arith.constant 0 : index
    %2 = vector.load %arg2[%c0_2, %c0_3] : memref<32x96xf32, #tpu.memory_space<vmem>>, vector<32x96xf32>
    %cst = arith.constant dense<0.000000e+00> : vector<8x96xf32>
    %3 = tpu.matmul %1, %2, %cst {dimension_numbers = #tpu.dot_dimension_numbers<[1], [0], [0], [1], [0, 0, 1, 1], [], []>} : vector<8x32xf32>, vector<32x96xf32>, vector<8x96xf32> -> vector<8x96xf32>
    %4 = vector.extract_strided_slice %3 {offsets = [0, 0], sizes = [8, 32], strides = [1, 1]} : vector<8x96xf32> to vector<8x32xf32>
    %5 = vector.shape_cast %4 : vector<8x32xf32> to vector<1x8x4x8xf32>
    %6 = tpu.transpose %5, [0, 2, 1, 3] : vector<1x8x4x8xf32> -> vector<1x4x8x8xf32>
    %7 = vector.shape_cast %6 : vector<1x4x8x8xf32> to vector<4x8x8xf32>
    %8 = vector.extract_strided_slice %3 {offsets = [0, 32], sizes = [8, 32], strides = [1, 1]} : vector<8x96xf32> to vector<8x32xf32>
    %9 = vector.shape_cast %8 : vector<8x32xf32> to vector<1x8x4x8xf32>
    %10 = tpu.transpose %9, [0, 2, 1, 3] : vector<1x8x4x8xf32> -> vector<1x4x8x8xf32>
    %11 = vector.shape_cast %10 : vector<1x4x8x8xf32> to vector<4x8x8xf32>
    %12 = vector.extract_strided_slice %3 {offsets = [0, 64], sizes = [8, 32], strides = [1, 1]} : vector<8x96xf32> to vector<8x32xf32>
    %13 = vector.shape_cast %12 : vector<8x32xf32> to vector<1x8x4x8xf32>
    %14 = tpu.transpose %13, [0, 2, 1, 3] : vector<1x8x4x8xf32> -> vector<1x4x8x8xf32>
    %15 = vector.shape_cast %14 : vector<1x4x8x8xf32> to vector<4x8x8xf32>
    "tpu.trace_start"() <{level = 10 : i32, message = "znd,zmd->znm"}> : () -> ()
    %cst_4 = arith.constant dense<0.000000e+00> : vector<4x8x8xf32>
    %16 = tpu.matmul %7, %11, %cst_4 {dimension_numbers = #tpu.dot_dimension_numbers<[2], [2], [1], [1], [0, 0, 0, 1, 1, 1], [0], [0]>} : vector<4x8x8xf32>, vector<4x8x8xf32>, vector<4x8x8xf32> -> vector<4x8x8xf32>
    "tpu.trace_stop"() : () -> ()
    %cst_5 = arith.constant 0.353553385 : f32
    %17 = vector.broadcast %cst_5 : f32 to vector<4x8x8xf32>
    %18 = arith.mulf %16, %17 : vector<4x8x8xf32>
    %cst_6 = arith.constant dense<0xFF800000> : vector<4x8xf32>
    %19 = vector.multi_reduction <maximumf>, %18, %cst_6 [2] : vector<4x8x8xf32> to vector<4x8xf32>
    %20 = vector.shape_cast %19 : vector<4x8xf32> to vector<4x8x1xf32>
    %21 = vector.broadcast %20 : vector<4x8x1xf32> to vector<4x8x8xf32>
    %22 = arith.subf %18, %21 : vector<4x8x8xf32>
    %23 = math.exp %22 : vector<4x8x8xf32>
    %cst_7 = arith.constant dense<0.000000e+00> : vector<4x8xf32>
    %24 = vector.multi_reduction <add>, %23, %cst_7 [2] : vector<4x8x8xf32> to vector<4x8xf32>
    %25 = vector.shape_cast %24 : vector<4x8xf32> to vector<4x8x1xf32>
    %26 = tpu.reciprocal %25 : vector<4x8x1xf32> -> vector<4x8x1xf32>
    %27 = vector.broadcast %26 : vector<4x8x1xf32> to vector<4x8x8xf32>
    %28 = arith.mulf %23, %27 : vector<4x8x8xf32>
    "tpu.trace_start"() <{level = 10 : i32, message = "znm,zmd->znd"}> : () -> ()
    %cst_8 = arith.constant dense<0.000000e+00> : vector<4x8x8xf32>
    %29 = tpu.matmul %28, %15, %cst_8 {dimension_numbers = #tpu.dot_dimension_numbers<[2], [1], [1], [2], [0, 0, 0, 1, 1, 2], [0], [0]>} : vector<4x8x8xf32>, vector<4x8x8xf32>, vector<4x8x8xf32> -> vector<4x8x8xf32>
    "tpu.trace_stop"() : () -> ()
    %30 = vector.shape_cast %29 : vector<4x8x8xf32> to vector<1x4x8x8xf32>
    %31 = tpu.transpose %30, [0, 2, 1, 3] : vector<1x4x8x8xf32> -> vector<1x8x4x8xf32>
    %32 = vector.shape_cast %31 : vector<1x8x4x8xf32> to vector<1x8x32xf32>
    %c0_9 = arith.constant 0 : index
    %c0_10 = arith.constant 0 : index
    %c0_11 = arith.constant 0 : index
    %33 = vector.load %arg3[%c0_9, %c0_10, %c0_11] : memref<1x8x32xf32, #tpu.memory_space<vmem>>, vector<1x8x32xf32>
    tpu.vector_store %arg3[%c0_9, %c0_10, %c0_11], %32 {strides = array<i32>} : memref<1x8x32xf32, #tpu.memory_space<vmem>>, vector<1x8x32xf32>,
    return
  }
  func.func @transform_0(%arg0: i32) -> (i32, i32, i32) {
    %c0_i32 = arith.constant 0 : i32
    %c0_i32_0 = arith.constant 0 : i32
    %c0_i32_1 = arith.constant 0 : i32
    return %arg0, %c0_i32, %c0_i32_0 : i32, i32, i32
  }
  func.func @transform_1(%arg0: i32) -> (i32, i32) {
    %c0_i32 = arith.constant 0 : i32
    %c0_i32_0 = arith.constant 0 : i32
    %c0_i32_1 = arith.constant 0 : i32
    return %c0_i32, %c0_i32_0 : i32, i32
  }
  func.func @transform_2(%arg0: i32) -> (i32, i32, i32) {
    %c0_i32 = arith.constant 0 : i32
    %c0_i32_0 = arith.constant 0 : i32
    %c0_i32_1 = arith.constant 0 : i32
    return %arg0, %c0_i32, %c0_i32_0 : i32, i32, i32
  }
}

</mosaic_0001>

<bundles_post_ra>
// kernel: tpu_custom_call.1
= control target key start
LH: loop header
LB: loop body
LE: loop exit
PB: predicated region body
PF: predicated region fallthrough
CT: control target
= control target key end

     0   :  { %7 = vsyncpa [#allocation3], 0  ;;  %s2312_s0 = inlined_call_operand.hbm [shape: f32[2,8,32], index: 0, kind: input, shape index: {}]   ;;  %s2313_s1 = inlined_call_operand.hbm [shape: f32[32,96], index: 1, kind: input, shape index: {}]   ;;  %s2314_s2 = inlined_call_operand.hbm [shape: f32[2,8,32], index: 2, kind: output, shape index: {}]  }
   0x1   :  { %9 = vsyncpa [#allocation3 + $0x1], 0 }
   0x2   :  { %10 = vsyncpa [#allocation6], 0 }
   0x3   :  { %11 = vsyncpa [#allocation4], 0 }
   0x4   :  { %13 = vsyncpa [#allocation4 + $0x1], 0  ;;  %s1952_s9 = smov 0   ;;  %s1954_s10 = smov 0  }
   0x5   :  { %s1956_s11 = smov 0   ;;  %s1958_s12 = smov 0  }
   0x6 LB: > { %s1973_s13 = sadd.s32 4294967295, %s1917_s12   ;;  %s1588_s14 = sadd.s32 4294967294, %s1917_s12   ;;  %s1917_s12 = sphi %s1958_s12, %s2334_s12   ;;  %s1913_s11 = sphi %s1956_s11, %s2333_s11   ;;  %s1909_s10 = sphi %s1954_s10, %s2332_s10   ;;  %s1905_s9 = sphi %s1952_s9, %s2331_s9  }
   0x7   : > { %p39_p0 = scmp.ne.s32.totalorder %s1909_s10, %s1905_s9  ;;  %p2315_p1 = scmp.eq.s32.totalorder %s1973_s13, 0 }
   0x8   : > { %p90_p3 = scmp.eq.s32.totalorder %s1588_s14, 1  ;;  %p1589_p5 = scmp.ge.s32.totalorder %s1917_s12, 1 }
   0x9   : > { %p1982_p4 = por %p2315_p1, %p39_p0  ;;  %p97_p7 = scmp.lt.s32.totalorder %s1917_s12, 3 }
   0xa   : > { %p1987_p6 = por %p90_p3, %p39_p0  ;;  %s1919_s18 = smov [#allocation5]  }
   0xb   : > { %s2318_s15 = scalar_select %p1982_p4, 1, 0 }
   0xc   : > { %s2319_s16 = scalar_select %p1987_p6, 1, 0 }
   0xd   : > { %p1992_p8 = pnand %p1589_p5, %p97_p7  ;;  %s109_s19 = sshll.u32 %s1919_s18, 4  ;;  %s1996_s19 = int_to_ptr.vmem [resolvable:$true] %s109_s19 }
   0xe   : > { %s2008_s21 = sadd.s32 1, %s1917_s12   ;;  %s26_s22 = sadd.s32 1, %s1913_s11 }
   0xf   : > { %s2320_s17 = scalar_select %p1992_p8, 1, 0 }
  0x10   : > { %p1709_p9 = pneg %p1992_p8  ;;  %s23_s23 = ssub.s32 %s1917_s12, %s2008_s21 }
  0x11   : > { %s1789_s26 = scalar_lea.hbm %s2313_s1, 512 }
  0x12   : > { %p2003_p11 = pnand %p1709_p9, %p2315_p1  ;;  %p1790_p12 = scmp.ne.s32.totalorder %s2313_s1, %s1789_s26 }
  0x13   : > { %p1796_p5 = scmp.lt.u32.totalorder %s1789_s26, %s2313_s1 }
  0x14   : > { %p1791_p13 = pneg %p2003_p11 }
  0x16   : > { %p1792_p0 = pnand %p1791_p13, %p1790_p12 }
  0x18   : > { %p1793_p3 = pneg %p1792_p0 }
  0x1a   : > { %p1798_p7 = pnand %p1796_p5, %p1793_p3 }
  0x1c   : > { %1801 = shalt.err (!%p1798_p7)
}
  0x1d   : > { %s1802_s3 = scalar_lea.vmem %s1996_s19, 512  ;;  %p1810_p2 = scmp.lt.s32.totalorder %s1996_s19, %s1996_s19 }
  0x1e   : > { %p1803_p9 = scmp.ne.s32.totalorder %s1996_s19, %s1802_s3  ;;  %p1811_p6 = scmp.lt.s32.totalorder %s1802_s3, %s1802_s3 }
  0x20   : > { %p1805_p10 = pnand %p1803_p9, %p1791_p13  ;;  %p1812_p4 = por %p1811_p6, %p1810_p2 }
  0x22   : > { %p1806_p1 = pneg %p1805_p10 }
  0x24   : > { %p1813_p8 = pnand %p1812_p4, %p1806_p1 }
  0x26   : > { %1816 = shalt.err (!%p1813_p8)
}
  0x27   : > { %s1920_s4 = smov 128   ;;  %s1921_s5 = smov 8  }
  0x28   : > { %1712 = dma.hbm_to_vmem [thread:$0]  (!%p2003_p11), %s2313_s1, 512, %s1996_s19, [#allocation6], %s1920_s4, %s1920_s4, %s1921_s5  }
  0x29   : > { %p24_p2 = scmp.eq.s32.totalorder %s23_s23, 0  ;;  %p33_p1 = scmp.ne.s32.totalorder %s1913_s11, %s1909_s10 }
  0x2a   : > { %p34_p4 = scmp.eq.s32.totalorder %s1917_s12, 0  ;;  %p1722_p6 = scmp.lt.s32.totalorder %s1917_s12, 2 }
  0x2b   : > { %s2039_s8 = scalar_select %p24_p2, %s1913_s11, %s26_s22  }
  0x2c   : > { %p35_p8 = por %p34_p4, %p33_p1  ;;  %p2322_p10 = scmp.eq.s32.totalorder %s1973_s13, 1 }
  0x2d   : > { %s123_s18 = sand.u32 1, %s1913_s11   ;;  %s1593_s24 = sshll.u32 %s1917_s12, 7 }
  0x2e   : > { %p2043_p12 = por %p2322_p10, %p33_p1  ;;  %s1592_s25 = sshll.u32 %s123_s18, 3 }
  0x2f   : > { %s2052_s27 = scalar_lea.hbm %s2312_s0, %s1593_s24  ;;  %s127_s19 = scalar_lea.vmem [#allocation2], %s1592_s25 }
  0x30   : > { %s134_s22 = sshll.u32 %s127_s19, 4  ;;  %p2054_p11 = pnand %p1722_p6, %p35_p8  ;;  %s2058_s22 = int_to_ptr.vmem [resolvable:$true] %s134_s22 }
  0x31   : > { %s124_s28 = scalar_lea.sflag [#allocation3], %s123_s18  ;;  %s1817_s29 = scalar_lea.hbm %s2052_s27, 128 }
  0x32   : > { %p1818_p13 = scmp.ne.s32.totalorder %s2052_s27, %s1817_s29  ;;  %p1819_p0 = pneg %p2054_p11 }
  0x33   : > { %s1822_s4 = scalar_lea.hbm %s2312_s0, 256  ;;  %p1823_p7 = scmp.lt.u32.totalorder %s2052_s27, %s2312_s0 }
  0x34   : > { %p1820_p3 = pnand %p1819_p0, %p1818_p13  ;;  %p1824_p9 = scmp.lt.u32.totalorder %s1822_s4, %s1817_s29 }
  0x35   : > { %p1826_p1 = scmp.lt.u32.totalorder %s1817_s29, %s2052_s27 }
  0x36   : > { %p1821_p5 = pneg %p1820_p3  ;;  %p1825_p2 = por %p1824_p9, %p1823_p7 }
  0x38   : > { %p1827_p4 = por %p1826_p1, %p1825_p2 }
  0x3a   : > { %p1828_p6 = pnand %p1827_p4, %p1821_p5 }
  0x3c   : > { %1831 = shalt.err (!%p1828_p6)
}
  0x3d   : > { %s1832_s7 = scalar_lea.vmem %s2058_s22, 128  ;;  %s1922_s18 = smov [#allocation2]  }
  0x3e   : > { %p1833_p8 = scmp.ne.s32.totalorder %s2058_s22, %s1832_s7  ;;  %s1837_s24 = sshll.u32 %s1922_s18, 4  ;;  %s1838_s24 = int_to_ptr.vmem [resolvable:$false] %s1837_s24 }
  0x3f   : > { %s1839_s25 = scalar_lea.vmem %s1838_s24, 256  ;;  %p1840_p3 = scmp.lt.s32.totalorder %s2058_s22, %s1838_s24 }
  0x40   : > { %p1835_p10 = pnand %p1833_p8, %p1819_p0  ;;  %p1841_p7 = scmp.lt.s32.totalorder %s1839_s25, %s1832_s7 }
  0x42   : > { %p1836_p13 = pneg %p1835_p10  ;;  %p1842_p9 = por %p1841_p7, %p1840_p3 }
  0x44   : > { %p1843_p2 = pnand %p1842_p9, %p1836_p13 }
  0x46   : > { %1846 = shalt.err (!%p1843_p2)
}
  0x47   : > { %1716 = dma.hbm_to_vmem [thread:$0]  (!%p2054_p11), %s2052_s27, 128, %s2058_s22, %s124_s28  }
  0x48   : > { %p2325_p5 = scmp.ne.s32.totalorder %s2320_s17, 0 }
  0x49   : > { %s2088_s20 = sand.u32 (!%p2325_p5), 1, %s1909_s10   ;;  %p2326_p0 = scmp.ne.s32.totalorder (!%p2325_p5), %s2318_s15, 0 }
  0x4a   : > { %143 = sbr.rel (%p2325_p5) target bundleno = 1477 (0x5c5), region = 28  ;;  %s1595_s26 = sshll.u32 (!%p2325_p5), %s2088_s20, 3 }
  0x4b   : > { %s146_s19 = scalar_lea.sflag (!%p2325_p5), [#allocation3], %s2088_s20  ;;  %s149_s29 = scalar_lea.vmem (!%p2325_p5), [#allocation2], %s1595_s26 }
  0x51   : > { %1892 = dma.done.wait (%p2326_p0), %s146_s19, 128  }
  0x52   : > { %1894 = vsyncadd (%p2326_p0), %s146_s19, 4294967168  ;;  %p2327_p11 = scmp.eq.s32.totalorder %s1973_s13, 0 }
  0x54   : > { %1896 = dma.done.wait (%p2327_p11), [#allocation6], 512   ;;  %p2328_p1 = pmov %p2327_p11 }
  0x55   : > { %v1923_v0 = vmov 0.0|0.0   ;;  %vm1924_vm0 = vmmov 0   ;;  %v1925_v1 = vmov 0.0   ;;  %v175_v2 = vld [vmem:[#allocation5] sm:$0xff]  ;;  %v176_v3 = vld [vmem:[#allocation5 + $0x8] sm:$0xff]  ;;  %v177_v4 = vld [vmem:[#allocation5 + $0x10] sm:$0xff]  ;;  %v268_v16 = vlaneseq }
  0x56   : > { %1898 = vsyncadd (%p2328_p1), [#allocation6], 4294966784  ;;  %1695 = vmatprep.subr.bf16.mxu0 %v1923_v0  ;;  %1652 = vmatprep.mubr.msk.f32.mxu0 %vm1924_vm0, %v1925_v1  ;;  %v1696_v5 = vpack.c.bf16 %v176_v3, %v175_v2  ;;  %v178_v6 = vld [vmem:[#allocation5 + $0x18] sm:$0xff]  ;;  %vm179_vm1 = vcmask 261120   ;;  %s1926_s15 = smov 104   ;;  %s1927_s17 = smov 120  }
  0x57   : > { %1655 = vmatprep.subr.mxu1 %v1925_v1  ;;  %1657 = vmatprep.mubr.msk.f32.mxu1 %vm1924_vm0, %v1925_v1  ;;  %v1699_v7 = vpack.c.bf16 %v178_v6, %v177_v4  ;;  %v174_v8 = vld [vmem:[%s149_s29] sm:$0xff]  ;;  %s1928_s27 = smov 96   ;;  %s1929_s22 = smov 112   ;;  %v1930_v14 = vmov 1983009808   ;;  %v269_v18 = vshrl.u32 %v268_v16, 7 }
  0x58   : > { %1697 = vmatpush3.bf16.msra.mxu0 %v1696_v5  ;;  %v266_v15 = vunpack.c.l.s4 %v1930_v14  ;;  %v1931_v19 = vmov 1934713408   ;;  %vm695_vm2 = vcmask 64512   ;;  %s1932_s23 = smov 64   ;;  %s1933_s28 = smov 16   ;;  %vm1489_vm3 = vcmask 130048  }
  0x59   : > { %1698 = vmatprep.subr.bf16.mxu0 %v1923_v0  ;;  %v298_v20 = vunpack.c.l.s4 %v1931_v19  ;;  %s1934_s30 = smov 8   ;;  %s1935_s3 = smov 24   ;;  %vm1491_vm4 = vcmask 195584  }
  0x5a   : > { %v267_v17 = vunpack.c.0.s8 %v266_v15  ;;  %s1620_s4 = sshll.u32 %s1973_s13, 7  ;;  %s173_s5 = scalar_lea.vmem [#allocation7], %s1595_s26 }
  0x5b   : > { %v299_v26 = vunpack.c.0.s8 %v298_v20  ;;  %s1508_s6 = sshll.u32 %s173_s5, 4  ;;  %s2267_s24 = scalar_lea.hbm %s2314_s2, %s1620_s4  ;;  %s2269_s6 = int_to_ptr.vmem [resolvable:$true] %s1508_s6 }
  0x5c   : > { %1700 = vmatpush3.bf16.msra.mxu0 %v1699_v7  ;;  %v2130_v23 = vsub.s32 %v267_v17, %v269_v18  ;;  %s1495_s13 = scalar_lea.sflag [#allocation4], %s2088_s20  ;;  %s1847_s25 = scalar_lea.vmem %s2269_s6, 128 }
  0x5d   : > { %1665 = vmatprep.subr.mxu0 %v1925_v1  ;;  %v2140_v31 = vsub.s32 %v299_v26, %v269_v18  ;;  %p1848_p4 = scmp.ne.s32.totalorder %s2269_s6, %s1847_s25  ;;  %s1936_s26 = smov [#allocation7]  }
  0x5e   : > { %s1851_s19 = sshll.u32 %s1936_s26, 4  ;;  %s1852_s19 = int_to_ptr.vmem [resolvable:$false] %s1851_s19 }
  0x5f   : > { %1653 = vmatmul.mubr.msk.f32.vlgmr.msra.gmra.mrb[0].mxu0 %vm179_vm1, %v174_v8  ;;  %p1849_p6 = pnand %p1848_p4, %p2043_p12  ;;  %s1853_s29 = scalar_lea.vmem %s1852_s19, 256 }
  0x60   : > { %1667 = vmatprep.mubr.msk.f32.mxu0 %vm1924_vm0, %v1925_v1  ;;  %p1854_p10 = scmp.lt.s32.totalorder %s2269_s6, %s1852_s19  ;;  %p1855_p13 = scmp.lt.s32.totalorder %s1853_s29, %s1847_s25 }
  0x61   : > { %p1850_p8 = pneg %p1849_p6 }
  0x62   : > { %p1856_p3 = por %p1855_p13, %p1854_p10 }
  0x64   : > { %p1857_p7 = pnand %p1856_p3, %p1850_p8 }
 0x132   : > { %v2111_v9 = vpop.f32.mrb[0].mxu0 }
 0x133   : > { %260 = vrot.lane.b32.xlu1 %v2111_v9, %s1926_s15  ;;  %254 = vrot.lane.b32.xlu0 %v2111_v9, %s1927_s17  ;;  %v1654_v10 = vpop.f32.mrb[1].mxu0 }
 0x137   : > { %399 = vrot.lane.b32.xlu1 %v2111_v9, %s1928_s27  ;;  %257 = vrot.lane.b32.xlu0 %v2111_v9, %s1929_s22 }
 0x1a5   : > { %v2117_v11 = vpop.permute.xlu0 %254  ;;  %v2120_v12 = vpop.permute.xlu1 %260 }
 0x1a6   : > { %401 = vrot.lane.b32.xlu0 %v2117_v11, %s1928_s27  ;;  %v279_v24 = vcombine.low %v2117_v11, %v2120_v12  ;;  %v280_v25 = vcombine.high %v2117_v11, %v2120_v12 }
 0x1a8   : > { %v287_v29 = vrot.slane %v279_v24, %v2130_v23  ;;  %v294_v30 = vrot.slane %v280_v25, %v2130_v23 }
 0x1a9   : > { %v2122_v13 = vpop.permute.xlu0 %257  ;;  %v400_v32 = vpop.permute.xlu1 %399 }
 0x1aa   : > { %405 = vrot.lane.b32.xlu0 %v2120_v12, %s1928_s27  ;;  %403 = vrot.lane.b32.xlu1 %v2122_v13, %s1928_s27  ;;  %v263_v21 = vcombine.low %v2111_v9, %v2122_v13  ;;  %v264_v22 = vcombine.high %v2111_v9, %v2122_v13 }
 0x1ac   : > { %v271_v27 = vrot.slane %v263_v21, %v2130_v23  ;;  %v278_v28 = vrot.slane %v264_v22, %v2130_v23 }
 0x1ae   : > { %v295_v33 = vcombine.low %v271_v27, %v287_v29  ;;  %v296_v34 = vcombine.high %v271_v27, %v287_v29  ;;  %v311_v35 = vcombine.low %v278_v28, %v294_v30  ;;  %v312_v36 = vcombine.high %v278_v28, %v294_v30 }
 0x1b0   : > { %v303_v38 = vrot.slane %v295_v33, %v2140_v31  ;;  %v310_v39 = vrot.slane %v296_v34, %v2140_v31  ;;  %v319_v40 = vrot.slane %v311_v35, %v2140_v31  ;;  %v326_v41 = vrot.slane %v312_v36, %v2140_v31 }
 0x1b2   : > { %v331_v52 = vcombine.low %v303_v38, %v310_v39  ;;  %v1599_v53 = vcombine.high %v303_v38, %v310_v39  ;;  %v347_v54 = vcombine.low %v319_v40, %v326_v41  ;;  %v1600_v55 = vcombine.high %v319_v40, %v326_v41 }
 0x1b4   : > { %v338_v0 = vrot.slane %v331_v52, %v2130_v23  ;;  %v346_v2 = vrot.slane %v1599_v53, %v2130_v23  ;;  %v354_v3 = vrot.slane %v347_v54, %v2130_v23  ;;  %v362_v4 = vrot.slane %v1600_v55, %v2130_v23 }
 0x1b6   : > { %v363_v17 = vcombine.low %v338_v0, %v346_v2  ;;  %v364_v18 = vcombine.high %v338_v0, %v346_v2  ;;  %v379_v19 = vcombine.low %v354_v3, %v362_v4  ;;  %v380_v20 = vcombine.high %v354_v3, %v362_v4 }
 0x1b8   : > { %v371_v30 = vrot.slane %v363_v17, %v2140_v31  ;;  %v378_v33 = vrot.slane %v364_v18, %v2140_v31  ;;  %v394_v34 = vrot.slane %v380_v20, %v2140_v31 }
 0x1ba   : > { %v397_v38 = vcombine.low %v378_v33, %v394_v34 }
 0x218   : > { %v402_v37 = vpop.permute.xlu0 %401 }
 0x21c   : > { %v404_v42 = vpop.permute.xlu1 %403  ;;  %v406_v43 = vpop.permute.xlu0 %405 }
 0x21d   : > { %v411_v44 = vcombine.low %v400_v32, %v404_v42  ;;  %v412_v45 = vcombine.high %v400_v32, %v404_v42  ;;  %v427_v46 = vcombine.low %v402_v37, %v406_v43  ;;  %v428_v47 = vcombine.high %v402_v37, %v406_v43 }
 0x21e   : > { %v387_v32 = vrot.slane %v379_v19, %v2140_v31  ;;  %v398_v42 = vcombine.high %v378_v33, %v394_v34 }
 0x21f   : > { %v419_v48 = vrot.slane %v411_v44, %v2130_v23  ;;  %v426_v49 = vrot.slane %v412_v45, %v2130_v23  ;;  %v435_v50 = vrot.slane %v427_v46, %v2130_v23  ;;  %v442_v51 = vrot.slane %v428_v47, %v2130_v23 }
 0x220   : > { %v395_v37 = vcombine.low %v371_v30, %v387_v32  ;;  %v396_v40 = vcombine.high %v371_v30, %v387_v32 }
 0x221   : > { %v443_v56 = vcombine.low %v419_v48, %v435_v50  ;;  %v444_v57 = vcombine.high %v419_v48, %v435_v50  ;;  %v459_v58 = vcombine.low %v426_v49, %v442_v51  ;;  %v460_v59 = vcombine.high %v426_v49, %v442_v51 }
 0x223   : > { %v451_v60 = vrot.slane %v443_v56, %v2140_v31  ;;  %v458_v61 = vrot.slane %v444_v57, %v2140_v31  ;;  %v467_v62 = vrot.slane %v459_v58, %v2140_v31  ;;  %v474_v63 = vrot.slane %v460_v59, %v2140_v31 }
 0x225   : > { %v479_v5 = vcombine.low %v451_v60, %v458_v61  ;;  %v1601_v6 = vcombine.high %v451_v60, %v458_v61  ;;  %v495_v7 = vcombine.low %v467_v62, %v474_v63  ;;  %v1602_v8 = vcombine.high %v467_v62, %v474_v63 }
 0x227   : > { %v486_v10 = vrot.slane %v479_v5, %v2130_v23  ;;  %v494_v14 = vrot.slane %v1601_v6, %v2130_v23  ;;  %v502_v15 = vrot.slane %v495_v7, %v2130_v23  ;;  %v510_v16 = vrot.slane %v1602_v8, %v2130_v23 }
 0x229   : > { %v511_v21 = vcombine.low %v486_v10, %v494_v14  ;;  %v512_v22 = vcombine.high %v486_v10, %v494_v14  ;;  %v527_v24 = vcombine.low %v502_v15, %v510_v16  ;;  %v528_v25 = vcombine.high %v502_v15, %v510_v16 }
 0x22b   : > { %v519_v26 = vrot.slane %v511_v21, %v2140_v31  ;;  %v535_v27 = vrot.slane %v527_v24, %v2140_v31  ;;  %v526_v28 = vrot.slane %v512_v22, %v2140_v31  ;;  %v542_v29 = vrot.slane %v528_v25, %v2140_v31 }
 0x22d   : > { %v543_v35 = vcombine.low %v519_v26, %v535_v27  ;;  %v545_v36 = vcombine.low %v526_v28, %v542_v29  ;;  %v544_v39 = vcombine.high %v519_v26, %v535_v27  ;;  %v546_v41 = vcombine.high %v526_v28, %v542_v29 }
 0x22f   : > { %1656 = vmatpush3.xpose.msk.msra.mxu1 %vm695_vm2, %v543_v35  ;;  %1666 = vmatpush3.xpose.msk.msra.mxu0 %vm695_vm2, %v545_v36 }
 0x230   : > { %1660 = vmatprep.subr.mxu1 %v1925_v1  ;;  %1675 = vmatprep.subr.mxu0 %v1925_v1 }
 0x232   : > { %1658 = vmatmul.mubr.msk.f32.vlgmr.msra.gmra.mrb[0].mxu1 %vm695_vm2, %v395_v37  ;;  %1668 = vmatmul.mubr.msk.f32.vlgmr.msra.gmra.mrb[2].mxu0 %vm695_vm2, %v397_v38 }
 0x233   : > { %1661 = vmatpush3.xpose.msk.msra.mxu1 %vm695_vm2, %v544_v39  ;;  %1662 = vmatprep.mubr.msk.f32.mxu1 %vm1924_vm0, %v1925_v1 }
 0x234   : > { %1670 = vmatprep.subr.mxu1 %v1925_v1  ;;  %1677 = vmatprep.mubr.msk.f32.mxu0 %vm1924_vm0, %v1925_v1 }
 0x236   : > { %1663 = vmatmul.mubr.msk.f32.vlgmr.msra.gmra.mrb[2].mxu1 %vm695_vm2, %v396_v40 }
 0x237   : > { %1671 = vmatpush3.xpose.msk.msra.mxu1 %vm695_vm2, %v546_v41  ;;  %1672 = vmatprep.mubr.msk.f32.mxu1 %vm1924_vm0, %v1925_v1 }
 0x238   : > { %1680 = vmatprep.subr.mxu1 %v1925_v1 }
 0x23a   : > { %1673 = vmatmul.mubr.msk.f32.vlgmr.msra.gmra.mrb[4].mxu1 %vm695_vm2, %v398_v42 }
 0x23b   : > { %1682 = vmatprep.mubr.msk.f32.mxu1 %vm1924_vm0, %v1925_v1 }
 0x305   : > { %v768_v43 = vpop.f32.mrb[0].mxu1  ;;  %v920_v44 = vpop.f32.mrb[2].mxu0 }
 0x306   : > { %v1000_v45 = vmul.f32 0.35355338, %v768_v43  ;;  %v1659_v46 = vpop.f32.mrb[1].mxu1  ;;  %v1669_v47 = vpop.f32.mrb[3].mxu0  ;;  %v1002_v52 = vmul.f32 0.35355338, %v920_v44 }
 0x308   : > { %v1004_v48 = vsel %vm695_vm2, %v1000_v45, -inf  ;;  %v1010_v58 = vsel %vm695_vm2, %v1002_v52, -inf }
 0x309   : > { %1005 = vmax.xlane.f32.xlu1 %v1004_v48  ;;  %v844_v49 = vpop.f32.mrb[2].mxu1 }
 0x30a   : > { %v1001_v50 = vmul.f32 0.35355338, %v844_v49  ;;  %v1664_v51 = vpop.f32.mrb[3].mxu1 }
 0x30c   : > { %v1007_v53 = vsel %vm695_vm2, %v1001_v50, -inf }
 0x30d   : > { %1008 = vmax.xlane.f32.xlu0 %v1007_v53  ;;  %v996_v54 = vpop.f32.mrb[4].mxu1 }
 0x30e   : > { %v1003_v55 = vmul.f32 0.35355338, %v996_v54  ;;  %v1674_v56 = vpop.f32.mrb[5].mxu1 }
 0x310   : > { %v1013_v57 = vsel %vm695_vm2, %v1003_v55, -inf }
 0x311   : > { %1014 = vmax.xlane.f32.xlu1 %v1013_v57  ;;  %1011 = vmax.xlane.f32.xlu0 %v1010_v58 }
 0x322   : > { %549 = vrot.lane.b32.xlu1 %v2117_v11, %s1932_s23 }
 0x327   : > { %547 = vrot.lane.b32.xlu0 %v2111_v9, %s1932_s23 }
 0x396   : > { %v1006_v59 = vpop.xlane.xlu1 %1005 }
 0x397   : > { %v1016_v60 = vsub.f32 %v1000_v45, %v1006_v59 }
 0x399   : > { %v1020_v61 = vmul.f32 1.442695, %v1016_v60 }
 0x39a   : > { %v1009_v62 = vpop.xlane.xlu0 %1008 }
 0x39b   : > { %1773 = vpow2.f32 %v1020_v61  ;;  %v1017_v63 = vsub.f32 %v1001_v50, %v1009_v62 }
 0x39d   : > { %v1022_v0 = vmul.f32 1.442695, %v1017_v63 }
 0x39e   : > { %v1015_v2 = vpop.xlane.xlu1 %1014  ;;  %v1012_v3 = vpop.xlane.xlu0 %1011 }
 0x39f   : > { %1775 = vpow2.f32 %v1022_v0  ;;  %v1019_v4 = vsub.f32 %v1003_v55, %v1015_v2  ;;  %v1018_v5 = vsub.f32 %v1002_v52, %v1012_v3 }
 0x3a1   : > { %v1026_v6 = vmul.f32 1.442695, %v1019_v4  ;;  %v1024_v7 = vmul.f32 1.442695, %v1018_v5 }
 0x3a2   : > { %v550_v18 = vpop.permute.xlu1 %549  ;;  %v548_v19 = vpop.permute.xlu0 %547 }
 0x3a3   : > { %1777 = vpow2.f32 %v1026_v6 }
 0x3a4   : > { %1779 = vpow2.f32 %v1024_v7 }
 0x3a5   : > { %v2198_v11 = vpop.eup %1773 }
 0x3a6   : > { %v1028_v9 = vsel %vm695_vm2, %v2198_v11, 0.0 }
 0x3a7   : > { %1029 = vadd.xlane.f32.xlu0 %v1028_v9 }
 0x3a9   : > { %v1776_v8 = vpop.eup %1775 }
 0x3aa   : > { %v1031_v10 = vsel %vm695_vm2, %v1776_v8, 0.0 }
 0x3ab   : > { %1032 = vadd.xlane.f32.xlu1 %v1031_v10 }
 0x3ad   : > { %v2203_v14 = vpop.eup %1777 }
 0x3ae   : > { %v2205_v15 = vpop.eup %1779  ;;  %v1037_v16 = vsel %vm695_vm2, %v2203_v14, 0.0 }
 0x3af   : > { %1038 = vadd.xlane.f32.xlu1 %v1037_v16  ;;  %v1034_v17 = vsel %vm695_vm2, %v2205_v15, 0.0 }
 0x3b0   : > { %1035 = vadd.xlane.f32.xlu0 %v1034_v17 }
 0x3c0   : > { %551 = vrot.lane.b32.xlu1 %v2122_v13, %s1932_s23 }
 0x3c6   : > { %553 = vrot.lane.b32.xlu0 %v2120_v12, %s1932_s23 }
 0x434   : > { %v1030_v21 = vpop.xlane.xlu0 %1029 }
 0x435   : > { %1781 = vrcp.f32 %v1030_v21 }
 0x438   : > { %v1033_v20 = vpop.xlane.xlu1 %1032 }
 0x439   : > { %1783 = vrcp.f32 %v1033_v20 }
 0x43c   : > { %v1039_v22 = vpop.xlane.xlu1 %1038 }
 0x43d   : > { %v1036_v24 = vpop.xlane.xlu0 %1035  ;;  %1785 = vrcp.f32 %v1039_v22 }
 0x43e   : > { %1787 = vrcp.f32 %v1036_v24 }
 0x43f   : > { %v1782_v52 = vpop.eup %1781 }
 0x440   : > { %v552_v25 = vpop.permute.xlu1 %551  ;;  %v1044_v63 = vmul.f32 %v1782_v52, %v2198_v11 }
 0x441   : > { %v559_v26 = vcombine.low %v548_v19, %v552_v25  ;;  %v560_v27 = vcombine.high %v548_v19, %v552_v25  ;;  %v554_v28 = vpop.permute.xlu0 %553 }
 0x442   : > { %v575_v29 = vcombine.low %v550_v18, %v554_v28  ;;  %v576_v30 = vcombine.high %v550_v18, %v554_v28 }
 0x443   : > { %v567_v32 = vrot.slane %v559_v26, %v2130_v23  ;;  %v574_v33 = vrot.slane %v560_v27, %v2130_v23  ;;  %v1784_v56 = vpop.eup %1783 }
 0x444   : > { %v583_v13 = vrot.slane %v575_v29, %v2130_v23  ;;  %v590_v12 = vrot.slane %v576_v30, %v2130_v23  ;;  %v1045_v0 = vmul.f32 %v1784_v56, %v1776_v8 }
 0x446   : > { %v591_v34 = vcombine.low %v567_v32, %v583_v13  ;;  %v592_v35 = vcombine.high %v567_v32, %v583_v13  ;;  %v607_v36 = vcombine.low %v574_v33, %v590_v12  ;;  %v608_v37 = vcombine.high %v574_v33, %v590_v12 }
 0x447   : > { %v1786_v62 = vpop.eup %1785 }
 0x448   : > { %v599_v38 = vrot.slane %v591_v34, %v2140_v31  ;;  %v606_v39 = vrot.slane %v592_v35, %v2140_v31  ;;  %v615_v40 = vrot.slane %v607_v36, %v2140_v31  ;;  %v622_v41 = vrot.slane %v608_v37, %v2140_v31  ;;  %v1788_v2 = vpop.eup %1787 }
 0x449   : > { %v1047_v5 = vmul.f32 %v1786_v62, %v2203_v14  ;;  %v1046_v6 = vmul.f32 %v1788_v2, %v2205_v15 }
 0x44a   : > { %v627_v42 = vcombine.low %v599_v38, %v606_v39  ;;  %v1603_v43 = vcombine.high %v599_v38, %v606_v39  ;;  %v643_v44 = vcombine.low %v615_v40, %v622_v41  ;;  %v1604_v45 = vcombine.high %v615_v40, %v622_v41 }
 0x44c   : > { %v634_v46 = vrot.slane %v627_v42, %v2130_v23  ;;  %v642_v47 = vrot.slane %v1603_v43, %v2130_v23  ;;  %v650_v48 = vrot.slane %v643_v44, %v2130_v23  ;;  %v658_v49 = vrot.slane %v1604_v45, %v2130_v23 }
 0x44e   : > { %v659_v50 = vcombine.low %v634_v46, %v642_v47  ;;  %v660_v51 = vcombine.high %v634_v46, %v642_v47  ;;  %v675_v53 = vcombine.low %v650_v48, %v658_v49  ;;  %v676_v54 = vcombine.high %v650_v48, %v658_v49 }
 0x450   : > { %v667_v55 = vrot.slane %v659_v50, %v2140_v31  ;;  %v683_v57 = vrot.slane %v675_v53, %v2140_v31  ;;  %v674_v58 = vrot.slane %v660_v51, %v2140_v31  ;;  %v690_v59 = vrot.slane %v676_v54, %v2140_v31 }
 0x452   : > { %v691_v60 = vcombine.low %v667_v55, %v683_v57  ;;  %v692_v61 = vcombine.high %v667_v55, %v683_v57  ;;  %v693_v3 = vcombine.low %v674_v58, %v690_v59  ;;  %v694_v4 = vcombine.high %v674_v58, %v690_v59 }
 0x454   : > { %1676 = vmatpush3.msra.mxu0 %v691_v60  ;;  %1681 = vmatpush3.msra.mxu1 %v692_v61 }
 0x455   : > { %1678 = vmatmul.mubr.msk.f32.vlgmr.msra.gmra.mrb[4].mxu0 %vm695_vm2, %v1044_v63  ;;  %1683 = vmatmul.mubr.msk.f32.vlgmr.msra.gmra.mrb[6].mxu1 %vm695_vm2, %v1045_v0 }
 0x456   : > { %1685 = vmatprep.subr.mxu0 %v1925_v1  ;;  %1690 = vmatprep.subr.mxu1 %v1925_v1 }
 0x457   : > { %1686 = vmatpush3.msra.mxu0 %v693_v3  ;;  %1691 = vmatpush3.msra.mxu1 %v694_v4 }
 0x458   : > { %1687 = vmatprep.mubr.msk.f32.mxu0 %vm1924_vm0, %v1925_v1  ;;  %1692 = vmatprep.mubr.msk.f32.mxu1 %vm1924_vm0, %v1925_v1 }
 0x459   : > { %1688 = vmatmul.mubr.msk.f32.vlgmr.msra.gmra.mrb[6].mxu0 %vm695_vm2, %v1046_v6  ;;  %1693 = vmatmul.mubr.msk.f32.vlgmr.msra.gmra.mrb[8].mxu1 %vm695_vm2, %v1047_v5 }
 0x528   : > { %v1117_v7 = vpop.f32.mrb[4].mxu0  ;;  %v1190_v11 = vpop.f32.mrb[6].mxu1 }
 0x529   : > { %v1679_v9 = vpop.f32.mrb[5].mxu0  ;;  %v1684_v8 = vpop.f32.mrb[7].mxu1 }
 0x52c   : > { %v1263_v10 = vpop.f32.mrb[6].mxu0  ;;  %v1336_v14 = vpop.f32.mrb[8].mxu1 }
 0x52d   : > { %v1340_v16 = vcombine.low %v1117_v7, %v1263_v10  ;;  %v1341_v15 = vcombine.high %v1117_v7, %v1263_v10  ;;  %v1356_v17 = vcombine.low %v1190_v11, %v1336_v14  ;;  %v1357_v18 = vcombine.high %v1190_v11, %v1336_v14  ;;  %v1689_v19 = vpop.f32.mrb[7].mxu0  ;;  %v1694_v20 = vpop.f32.mrb[9].mxu1 }
 0x52f   : > { %v1348_v21 = vrot.slane %v1340_v16, %v2130_v23  ;;  %v1355_v1 = vrot.slane %v1341_v15, %v2130_v23  ;;  %v1364_v22 = vrot.slane %v1356_v17, %v2130_v23  ;;  %v1371_v24 = vrot.slane %v1357_v18, %v2130_v23 }
 0x531   : > { %v1372_v25 = vcombine.low %v1348_v21, %v1364_v22  ;;  %v1373_v26 = vcombine.high %v1348_v21, %v1364_v22  ;;  %v1388_v27 = vcombine.low %v1355_v1, %v1371_v24  ;;  %v1389_v28 = vcombine.high %v1355_v1, %v1371_v24 }
 0x533   : > { %v1380_v29 = vrot.slane %v1372_v25, %v2140_v31  ;;  %v1387_v30 = vrot.slane %v1373_v26, %v2140_v31  ;;  %v1396_v32 = vrot.slane %v1388_v27, %v2140_v31  ;;  %v1403_v33 = vrot.slane %v1389_v28, %v2140_v31 }
 0x535   : > { %v1408_v13 = vcombine.low %v1380_v29, %v1387_v30  ;;  %v1617_v12 = vcombine.high %v1380_v29, %v1387_v30  ;;  %v1424_v34 = vcombine.low %v1396_v32, %v1403_v33  ;;  %v1618_v35 = vcombine.high %v1396_v32, %v1403_v33 }
 0x537   : > { %v1415_v36 = vrot.slane %v1408_v13, %v2130_v23  ;;  %v1423_v37 = vrot.slane %v1617_v12, %v2130_v23  ;;  %v1431_v38 = vrot.slane %v1424_v34, %v2130_v23  ;;  %v1439_v39 = vrot.slane %v1618_v35, %v2130_v23 }
 0x539   : > { %v1441_v40 = vcombine.high %v1415_v36, %v1423_v37  ;;  %v1457_v41 = vcombine.high %v1431_v38, %v1439_v39  ;;  %v1440_v42 = vcombine.low %v1415_v36, %v1423_v37  ;;  %v1456_v43 = vcombine.low %v1431_v38, %v1439_v39 }
 0x53b   : > { %v1455_v44 = vrot.slane %v1441_v40, %v2140_v31  ;;  %v1471_v45 = vrot.slane %v1457_v41, %v2140_v31  ;;  %v1448_v46 = vrot.slane %v1440_v42, %v2140_v31  ;;  %v1464_v47 = vrot.slane %v1456_v43, %v2140_v31 }
 0x53d   : > { %v1474_v48 = vcombine.low %v1455_v44, %v1471_v45  ;;  %v1473_v49 = vcombine.high %v1448_v46, %v1464_v47  ;;  %v1475_v50 = vcombine.high %v1455_v44, %v1471_v45  ;;  %v1472_v51 = vcombine.low %v1448_v46, %v1464_v47 }
 0x53f   : > { %1481 = vrot.lane.b32.xlu0 %v1474_v48, %s1933_s28  ;;  %1477 = vrot.lane.b32.xlu1 %v1473_v49, %s1934_s30 }
 0x543   : > { %1485 = vrot.lane.b32.xlu1 %v1475_v50, %s1935_s3 }
 0x5b1   : > { %v1478_v23 = vpop.permute.xlu1 %1477  ;;  %v1482_v52 = vpop.permute.xlu0 %1481 }
 0x5b2   : > { %v1488_v53 = vsel %vm695_vm2, %v1472_v51, %v1478_v23 }
 0x5b3   : > { %v1490_v54 = vsel %vm1489_vm3, %v1488_v53, %v1482_v52 }
 0x5b5   : > { %v1486_v31 = vpop.permute.xlu1 %1485 }
 0x5b6   : > { %v1492_v55 = vsel %vm1491_vm4, %v1490_v54, %v1486_v31 }
 0x5b7   : > { %1493 = vst.msk [vmem:[%s173_s5] sm:$0xff] %vm179_vm1, %v1492_v55 }
 0x5b8   : > { %1860 = shalt.err (!%p1857_p7)
}
 0x5b9   : > { %s1861_s20 = scalar_lea.hbm %s2267_s24, 128  ;;  %s1865_s27 = scalar_lea.hbm %s2314_s2, 256 }
 0x5ba   : > { %p1862_p9 = scmp.ne.s32.totalorder %s2267_s24, %s1861_s20  ;;  %p1866_p0 = scmp.lt.u32.totalorder %s2267_s24, %s2314_s2 }
 0x5bb   : > { %p1867_p11 = scmp.lt.u32.totalorder %s1865_s27, %s1861_s20  ;;  %p1869_p4 = scmp.lt.u32.totalorder %s1861_s20, %s2267_s24 }
 0x5bc   : > { %p1863_p2 = pnand %p1862_p9, %p2043_p12 }
 0x5bd   : > { %p1868_p1 = por %p1867_p11, %p1866_p0 }
 0x5be   : > { %p1864_p5 = pneg %p1863_p2 }
 0x5bf   : > { %p1870_p6 = por %p1869_p4, %p1868_p1 }
 0x5c1   : > { %p1871_p8 = pnand %p1870_p6, %p1864_p5 }
 0x5c3   : > { %1874 = shalt.err (!%p1871_p8)
}
 0x5c4   : > { %1707 = dma.vmem_to_hbm [thread:$0]  (%p2043_p12), %s2269_s6, 128, %s2267_s24, %s1495_s13  }
 0x5c5 PF: > { %s1520_s28 = sand.u32 1, %s1905_s9   ;;  %p2329_p10 = scmp.ne.s32.totalorder %s2319_s16, 0 }
 0x5c6   : > { %p2330_p13 = scmp.ge.s32.totalorder %s1917_s12, 2  ;;  %s1521_s30 = scalar_lea.sflag [#allocation4], %s1520_s28 }
 0x5c8   : > { %p1718_p3 = pnand %p2330_p13, %p2329_p10 }
 0x5ca   : > { %1900 = dma.done.wait (!%p1718_p3), %s1521_s30, 128  }
 0x5cb   : > { %1902 = vsyncadd (!%p1718_p3), %s1521_s30, 4294967168  ;;  %p16_p7 = scmp.ge.s32.totalorder %s2008_s21, 4   ;;  %s2331_s9 = smov %s1909_s10 }
 0x5cc   : > { %s2332_s10 = smov %s1913_s11  ;;  %s2333_s11 = smov %s2039_s8 }
 0x5cd   : > { %s2334_s12 = smov %s2008_s21  ;;  %18 = sbr.rel (!%p16_p7) target bundleno = 6 (0x6), region = 77 }
 0x5d4   :  { %1526 = vsyncpa [#allocation3], 1 }
 0x5d5   :  { %1528 = vsyncpa [#allocation3 + $0x1], 1 }
 0x5d6   :  { %1529 = vsyncpa [#allocation6], 1 }
 0x5d7   :  { %1530 = vsyncpa [#allocation4], 1 }
 0x5d8   :  { %1532 = vsyncpa [#allocation4 + $0x1], 1 }

</bundles_post_ra>
